<compile_context>
chip_gen: v5e
topology: v5e:2x2
jax: 0.10.0
libtpu: 0.0.40
codegen_flags: <defaults>
</compile_context>

<pallas_src>
import numpy as np
import jax
import jax.numpy as jnp
from jax.experimental import pallas as pl
from jax.experimental.pallas import tpu as pltpu


# ----------------------------------------------------------------------------
# Host-side (vectorized numpy): per-axis nearest-neighbor source indices + pad mask.
# Mimics: F.interpolate(mode='nearest', scale_factor=s)  ->  center crop/pad to original size.
# PyTorch nearest (scale_factor given): out_size = floor(T*s), src = min(floor(i / s), T-1).
# ----------------------------------------------------------------------------
def _build_dim_map(T: int, scale: float):
    S = int(np.floor(T * scale))
    o = np.arange(T)
    if S < T:                                   # scaled grid smaller -> center pad with zeros
        pad_left = (T - S) // 2
        i = o - pad_left
        valid = ((i >= 0) & (i < S)).astype(np.int32)
        src = np.minimum(np.floor(np.maximum(i, 0) / scale), T - 1).astype(np.int32)
        src = src * valid                       # padded slots index block 0 (masked anyway)
    else:                                       # scaled grid larger (or equal) -> center crop
        crop_start = (S - T) // 2
        i = o + crop_start
        valid = np.ones(T, dtype=np.int32)
        src = np.minimum(np.floor(i / scale), T - 1).astype(np.int32)
    return src.astype(np.int32), valid.astype(np.int32)


def _build_hw_gather_matrix(src_h, valid_h, src_w, valid_w, H, W):
    """Q[s, o] = 1 iff flattened source index s == src of output o (and o is not padding).
    out_slice = x_slice(flat HW) @ Q  performs both the H and W nearest gathers + padding."""
    src_hw = (src_h.astype(np.int64)[:, None] * W + src_w[None, :]).reshape(-1)   # (HW,)
    valid_hw = (valid_h[:, None] * valid_w[None, :]).reshape(-1).astype(np.float32)
    HW = H * W
    q = np.zeros((HW, HW), dtype=np.float32)
    q[src_hw, np.arange(HW)] = valid_hw         # exactly one (or zero) nonzero per column
    return q


# ----------------------------------------------------------------------------
# Pallas kernel: one output depth slice (all NC channels) per grid step.
# x_ref already holds the *source* D-slice (picked by the scalar-prefetch index_map).
# ----------------------------------------------------------------------------
def _scale3d_kernel(src_d_ref, valid_d_ref, x_ref, q_ref, o_ref):
    d = pl.program_id(0)

    @pl.when(valid_d_ref[d] != 0)
    def _compute():
        # (NC, HW) @ (HW, HW): single MXU matmul does the H and W gathers + HW padding.
        y = jnp.dot(x_ref[0], q_ref[...], preferred_element_type=jnp.float32)
        o_ref[0] = y.astype(o_ref.dtype)

    @pl.when(valid_d_ref[d] == 0)
    def _zero_pad():
        o_ref[...] = jnp.zeros_like(o_ref)


def _run_scale3d(x_dnchw, src_d, valid_d, q):
    D, NC, HW = x_dnchw.shape
    itemsize = x_dnchw.dtype.itemsize
    cost = pl.CostEstimate(
        flops=int(2 * D * NC * HW * HW),
        transcendentals=0,
        bytes_accessed=int(2 * x_dnchw.size * itemsize + q.size * q.dtype.itemsize),
    )
    return pl.pallas_call(
        _scale3d_kernel,
        out_shape=jax.ShapeDtypeStruct((D, NC, HW), x_dnchw.dtype),
        grid_spec=pltpu.PrefetchScalarGridSpec(
            num_scalar_prefetch=2,
            grid=(D,),
            in_specs=[
                # source D-slice: data-dependent block index via scalar prefetch
                pl.BlockSpec((1, NC, HW), lambda d, src_d, valid_d: (src_d[d], 0, 0)),
                # fused H/W selection matrix (full, resident across steps)
                pl.BlockSpec((HW, HW), lambda d, src_d, valid_d: (0, 0)),
            ],
            out_specs=pl.BlockSpec((1, NC, HW), lambda d, src_d, valid_d: (d, 0, 0)),
        ),
        compiler_params=pltpu.CompilerParams(
            dimension_semantics=("parallel",),      # disjoint output blocks, no carried state
            vmem_limit_bytes=32 * 1024 * 1024,
        ),
        cost_estimate=cost,
    )(src_d, valid_d, x_dnchw, q)


# ----------------------------------------------------------------------------
# Module-equivalent wrapper.
# ----------------------------------------------------------------------------
class RandomScale3D:
    def __init__(self, scale_range=(0.8, 1.2), seed=0):
        self.scale_range = scale_range
        self._rng = np.random.default_rng(seed)   # host RNG: no device sync per call

    def __call__(self, voxels: jnp.ndarray) -> jnp.ndarray:
        # random scale draw (equivalent to torch.rand(1).item()*(hi-lo)+lo), on host.
        scale = float(self._rng.uniform(self.scale_range[0], self.scale_range[1]))

        squeeze = False
        if voxels.ndim == 3:                      # (D, H, W) -> (1, 1, D, H, W)
            voxels = voxels[None, None]
            squeeze = True
        N, C, D, H, W = voxels.shape
        NC = N * C

        src_d, valid_d = _build_dim_map(D, scale)
        src_h, valid_h = _build_dim_map(H, scale)
        src_w, valid_w = _build_dim_map(W, scale)

        # Selection matrices are exact 0/1 in bf16, so keep them in the input dtype for
        # bf16 inputs (halves VMEM/HBM bytes, native MXU rate); f32 otherwise.
        q_dtype = jnp.bfloat16 if voxels.dtype == jnp.bfloat16 else jnp.float32
        q = jnp.asarray(
            _build_hw_gather_matrix(src_h, valid_h, src_w, valid_w, H, W), dtype=q_dtype)

        # Layout plumbing: present lane-dense (D, NC, H*W) slabs to the kernel.
        x = jnp.transpose(voxels.reshape(NC, D, H * W), (1, 0, 2))
        out = _run_scale3d(
            x, jnp.asarray(src_d, dtype=jnp.int32), jnp.asarray(valid_d, dtype=jnp.int32), q)
        out = jnp.transpose(out, (1, 0, 2)).reshape(N, C, D, H, W)
        if squeeze:
            out = out[0, 0]

        # stash maps for the reference check in __main__
        self._last_maps = (src_d, valid_d, src_h, valid_h, src_w, valid_w)
        self._last_scale = scale
        return out


# ----------------------------------------------------------------------------
# Pure-numpy reference for correctness check.
# ----------------------------------------------------------------------------
def _ref(x, maps):
    src_d, valid_d, src_h, valid_h, src_w, valid_w = maps
    y = x[:, :, src_d][:, :, :, src_h][:, :, :, :, src_w]
    mask = (valid_d[:, None, None] * valid_h[None, :, None] * valid_w[None, None, :]).astype(x.dtype)
    return y * mask[None, None]


if __name__ == "__main__":
    key = jax.random.PRNGKey(0)

    # small 5D input: (N=2, C=4, D=16, H=16, W=16)
    x = jax.random.normal(key, (2, 4, 16, 16, 16), dtype=jnp.float32)

    mod = RandomScale3D(scale_range=(0.8, 1.2), seed=0)
    out = mod(x)
    out = jax.block_until_ready(out)

    ref = _ref(np.asarray(x), mod._last_maps)
    np.testing.assert_allclose(np.asarray(out), ref, rtol=1e-5, atol=1e-5)

    assert out.shape == x.shape and out.dtype == x.dtype
    print("KERNEL_OK")
</pallas_src>

<mosaic_0001>
module attributes {stable_mosaic.version = 11 : i64} {
  func.func @_scale3d_kernel(%arg0: i32, %arg1: memref<16xi32, #tpu.memory_space<smem>>, %arg2: memref<16xi32, #tpu.memory_space<smem>>, %arg3: memref<1x8x256xf32, #tpu.memory_space<vmem>>, %arg4: memref<256x256xf32, #tpu.memory_space<vmem>>, %arg5: memref<1x8x256xf32, #tpu.memory_space<vmem>>) attributes {dimension_semantics = [#tpu.dimension_semantics<parallel>], iteration_bounds = array<i64: 16>, scalar_prefetch = 2 : i64, scratch_operands = 0 : i64, tpu.core_type = #tpu.core_type<tc>, window_params = [{transform_indices = @transform_0, window_bounds = array<i64: 1, 8, 256>}, {pipeline_mode = #tpu.pipeline_mode<synchronous>, transform_indices = @transform_1, window_bounds = array<i64: 256, 256>}, {transform_indices = @transform_2, window_bounds = array<i64: 1, 8, 256>}]} {
    %0 = arith.index_cast %arg0 : i32 to index
    %1 = memref.load %arg2[%0] : memref<16xi32, #tpu.memory_space<smem>>
    %c0_i32 = arith.constant 0 : i32
    %2 = arith.cmpi ne, %1, %c0_i32 : i32
    %3 = arith.extui %2 : i1 to i32
    %c0_i32_0 = arith.constant 0 : i32
    %4 = arith.cmpi ne, %3, %c0_i32_0 : i32
    scf.if %4 {
      %c0 = arith.constant 0 : index
      %c0_3 = arith.constant 0 : index
      %c0_4 = arith.constant 0 : index
      %10 = vector.load %arg3[%c0, %c0_3, %c0_4] : memref<1x8x256xf32, #tpu.memory_space<vmem>>, vector<1x8x256xf32>
      %11 = vector.shape_cast %10 : vector<1x8x256xf32> to vector<8x256xf32>
      %c0_5 = arith.constant 0 : index
      %c0_6 = arith.constant 0 : index
      %12 = vector.load %arg4[%c0_5, %c0_6] : memref<256x256xf32, #tpu.memory_space<vmem>>, vector<256x256xf32>
      %cst = arith.constant dense<0.000000e+00> : vector<8x256xf32>
      %13 = tpu.matmul %11, %12, %cst {dimension_numbers = #tpu.dot_dimension_numbers<[1], [0], [0], [1], [0, 0, 1, 1], [], []>} : vector<8x256xf32>, vector<256x256xf32>, vector<8x256xf32> -> vector<8x256xf32>
      %c0_7 = arith.constant 0 : index
      %c0_8 = arith.constant 0 : index
      %c0_9 = arith.constant 0 : index
      %14 = vector.load %arg5[%c0_7, %c0_8, %c0_9] : memref<1x8x256xf32, #tpu.memory_space<vmem>>, vector<1x8x256xf32>
      %15 = vector.shape_cast %14 : vector<1x8x256xf32> to vector<8x256xf32>
      %16 = vector.shape_cast %13 : vector<8x256xf32> to vector<1x8x256xf32>
      tpu.vector_store %arg5[%c0_7, %c0_8, %c0_9], %16 {strides = array<i32>} : memref<1x8x256xf32, #tpu.memory_space<vmem>>, vector<1x8x256xf32>,
    } else {
    }
    %5 = arith.index_cast %arg0 : i32 to index
    %6 = memref.load %arg2[%5] : memref<16xi32, #tpu.memory_space<smem>>
    %c0_i32_1 = arith.constant 0 : i32
    %7 = arith.cmpi eq, %6, %c0_i32_1 : i32
    %8 = arith.extui %7 : i1 to i32
    %c0_i32_2 = arith.constant 0 : i32
    %9 = arith.cmpi ne, %8, %c0_i32_2 : i32
    scf.if %9 {
      %cst = arith.constant 0.000000e+00 : f32
      %10 = vector.broadcast %cst : f32 to vector<1x8x256xf32>
      %c0 = arith.constant 0 : index
      %c0_3 = arith.constant 0 : index
      %c0_4 = arith.constant 0 : index
      %11 = vector.load %arg5[%c0, %c0_3, %c0_4] : memref<1x8x256xf32, #tpu.memory_space<vmem>>, vector<1x8x256xf32>
      tpu.vector_store %arg5[%c0, %c0_3, %c0_4], %10 {strides = array<i32>} : memref<1x8x256xf32, #tpu.memory_space<vmem>>, vector<1x8x256xf32>,
    } else {
    }
    return
  }
  func.func @transform_0(%arg0: i32, %arg1: memref<16xi32, #tpu.memory_space<smem>>, %arg2: memref<16xi32, #tpu.memory_space<smem>>) -> (i32, i32, i32) {
    %0 = arith.index_cast %arg0 : i32 to index
    %1 = memref.load %arg1[%0] : memref<16xi32, #tpu.memory_space<smem>>
    %c0_i32 = arith.constant 0 : i32
    %c0_i32_0 = arith.constant 0 : i32
    %c0_i32_1 = arith.constant 0 : i32
    return %1, %c0_i32, %c0_i32_0 : i32, i32, i32
  }
  func.func @transform_1(%arg0: i32, %arg1: memref<16xi32, #tpu.memory_space<smem>>, %arg2: memref<16xi32, #tpu.memory_space<smem>>) -> (i32, i32) {
    %c0_i32 = arith.constant 0 : i32
    %c0_i32_0 = arith.constant 0 : i32
    %c0_i32_1 = arith.constant 0 : i32
    return %c0_i32, %c0_i32_0 : i32, i32
  }
  func.func @transform_2(%arg0: i32, %arg1: memref<16xi32, #tpu.memory_space<smem>>, %arg2: memref<16xi32, #tpu.memory_space<smem>>) -> (i32, i32, i32) {
    %c0_i32 = arith.constant 0 : i32
    %c0_i32_0 = arith.constant 0 : i32
    %c0_i32_1 = arith.constant 0 : i32
    return %arg0, %c0_i32, %c0_i32_0 : i32, i32, i32
  }
}

</mosaic_0001>

<bundles_post_ra>
// kernel: tpu_custom_call.1
= control target key start
LH: loop header
LB: loop body
LE: loop exit
PB: predicated region body
PF: predicated region fallthrough
CT: control target
= control target key end

     0   :  { %s747_s21 = smov [#allocation3]   ;;  %s748_s22 = smov [#allocation4]   ;;  %s968_s0 = inlined_call_operand.hbm [shape: s32[16], index: 0, kind: input, shape index: {}]   ;;  %s969_s2 = inlined_call_operand.hbm [shape: f32[16,8,256], index: 2, kind: input, shape index: {}]   ;;  %s970_s3 = inlined_call_operand.hbm [shape: f32[256,256], index: 3, kind: input, shape index: {}]   ;;  %s971_s4 = inlined_call_operand.hbm [shape: f32[16,8,256], index: 4, kind: output, shape index: {}]   ;;  %s972_s1 = inlined_call_operand.hbm [shape: s32[16], index: 1, kind: input, shape index: {}]  }
   0x1   :  { %973 = sst [smem:[#allocation18_spill]] %s970_s3  ;;  %s10_s17 = sshll.u32 %s968_s0, 4  ;;  %s11_s17 = int_to_ptr.hbm [resolvable:$true] %s10_s17 }
   0x2   :  { %s15_s20 = sshll.u32 %s972_s1, 4  ;;  %s16_s20 = int_to_ptr.hbm [resolvable:$true] %s15_s20 }
   0x3   :  { %13 = dma.hbm_to_smem %s11_s17, 16, %s747_s21, [#allocation2] }
   0x4   :  { %18 = dma.hbm_to_smem %s16_s20, 16, %s748_s22, [#allocation2] }
   0x5   :  { %705 = dma.done.wait [#allocation2], 32 }
   0x6   :  { %706 = vsyncadd [#allocation2], 4294967264 }
   0x7   :  { %21 = sfence }
   0x8   :  { %22 = vsyncpa [#allocation6], 0 }
   0x9   :  { %24 = vsyncpa [#allocation6 + $0x1], 0 }
   0xa   :  { %25 = vsyncpa [#allocation9], 0 }
   0xb   :  { %26 = vsyncpa [#allocation7], 0 }
   0xc   :  { %28 = vsyncpa [#allocation7 + $0x1], 0  ;;  %s784_s23 = smov 0   ;;  %s786_s0 = smov 0  }
   0xd   :  { %s788_s24 = smov 0   ;;  %s790_s1 = smov 0  }
   0xe   :  { %s792_s25 = smov 0   ;;  %s794_s26 = smov 0  }
   0xf   :  { %s796_s27 = smov 0  }
  0x10 LB: > { %s820_s28 = sadd.s32 4294967295, %s745_s27   ;;  %s455_s29 = sadd.s32 4294967294, %s745_s27   ;;  %s745_s27 = sphi %s796_s27, %s988_s27   ;;  %s741_s26 = sphi %s794_s26, %s987_s26   ;;  %s737_s25 = sphi %s792_s25, %s986_s25   ;;  %s733_s1 = sphi %s790_s1, %s985_s1   ;;  %s729_s24 = sphi %s788_s24, %s984_s24   ;;  %s725_s0 = sphi %s786_s0, %s983_s0   ;;  %s721_s23 = sphi %s784_s23, %s982_s23  }
  0x11   : > { %p57_p0 = scmp.eq.s32.totalorder %s820_s28, 0  ;;  %p100_p1 = scmp.ne.s32.totalorder %s729_s24, %s725_s0 }
  0x12   : > { %p101_p2 = scmp.eq.s32.totalorder %s820_s28, 15  ;;  %p106_p3 = scmp.ne.s32.totalorder %s725_s0, %s721_s23 }
  0x13   : > { %p107_p4 = scmp.eq.s32.totalorder %s455_s29, 15  ;;  %p456_p6 = scmp.ge.s32.totalorder %s745_s27, 1 }
  0x14   : > { %p829_p5 = por %p101_p2, %p100_p1  ;;  %p114_p8 = scmp.lt.s32.totalorder %s745_s27, 17 }
  0x15   : > { %p834_p7 = por %p107_p4, %p106_p3  ;;  %s976_s3 = sld [smem:[#allocation18_spill]] }
  0x16   : > { %p842_p9 = pnand %p456_p6, %p114_p8  ;;  %s749_s10 = smov [#allocation8]  }
  0x17   : > { %s127_s11 = sshll.u32 %s749_s10, 4  ;;  %s750_s12 = smov 256   ;;  %s128_s11 = int_to_ptr.vmem [resolvable:$true] %s127_s11 }
  0x18   : > { %p485_p10 = pneg %p842_p9  ;;  %s751_s13 = smov 16  }
  0x19   : > { %s851_s14 = sadd.s32 1, %s745_s27   ;;  %s38_s15 = sld [smem:[#allocation3 + %s745_s27]] }
  0x1a   : > { %p486_p11 = pnand %p485_p10, %p57_p0  ;;  %s39_s16 = sld [smem:[#allocation3 + %s851_s14]] }
  0x1b   : > { %s125_s8 = sshll.u32 %s976_s3, 4  ;;  %p50_p12 = scmp.ne.s32.totalorder %s741_s26, %s737_s25  ;;  %s126_s8 = int_to_ptr.hbm [resolvable:$true] %s125_s8 }
  0x1c   : > { %488 = dma.hbm_to_vmem [thread:$0]  (!%p486_p11), %s126_s8, 8192, %s128_s11, [#allocation9], %s750_s12, %s750_s12, %s751_s13  }
  0x1d   : > { %p56_p13 = scmp.ne.s32.totalorder %s737_s25, %s733_s1  ;;  %p51_p1 = scmp.eq.s32.totalorder %s745_s27, 0 }
  0x1e   : > { %s87_s17 = ssub.s32 %s745_s27, %s851_s14  ;;  %s90_s18 = sadd.s32 1, %s729_s24 }
  0x1f   : > { %p865_p2 = por %p57_p0, %p56_p13  ;;  %p88_p3 = scmp.eq.s32.totalorder %s87_s17, 0 }
  0x20   : > { %s141_s20 = sand.u32 1, %s741_s26   ;;  %s43_s21 = sadd.s32 1, %s741_s26 }
  0x21   : > { %p500_p4 = scmp.lt.s32.totalorder %s745_s27, 16  ;;  %s40_s22 = ssub.s32 %s38_s15, %s39_s16 }
  0x22   : > { %p52_p6 = por %p51_p1, %p50_p12  ;;  %p41_p8 = scmp.eq.s32.totalorder %s40_s22, 0 }
  0x23   : > { %s459_s29 = sshll.u32 %s141_s20, 4  ;;  %s142_s22 = scalar_lea.sflag [#allocation6], %s141_s20 }
  0x24   : > { %s873_s6 = scalar_select %p88_p3, %s729_s24, %s90_s18  }
  0x25   : > { %s876_s1 = scalar_select %p41_p8, %s741_s26, %s43_s21  }
  0x26   : > { %s477_s7 = scalar_select %p52_p6, [#allocation3], [#allocation11] }
  0x27   : > { %979 = sst [smem:[#allocation17_spill]] %s876_s1  ;;  %p879_p10 = pnand %p500_p4, %p52_p6 }
  0x28   : > { %s478_s8 = scalar_select %p52_p6, %s745_s27, 0 }
  0x29   : > { %s990_s7 = smov (!%p500_p4, %s477_s7), [#allocation12]  ;;  %s145_s12 = scalar_lea.vmem [#allocation5], %s459_s29 }
  0x2a   : > { %s992_s8 = smov (!%p500_p4, %s478_s8), 0  ;;  %s155_s13 = sshll.u32 %s145_s12, 4  ;;  %s156_s13 = int_to_ptr.vmem [resolvable:$true] %s155_s13 }
  0x2b   : > { %s146_s11 = sld [smem:[%s990_s7 + %s992_s8]]  ;;  %p623_p12 = pneg %p879_p10 }
  0x2c   : > { %s626_s8 = scalar_lea.hbm %s969_s2, 256 }
  0x31   : > { %s473_s15 = sshll.u32 %s146_s11, 4 }
  0x32   : > { %s151_s18 = scalar_lea.hbm %s969_s2, %s473_s15 }
  0x33   : > { %s153_s21 = sshll.u32 %s151_s18, 4  ;;  %s154_s21 = int_to_ptr.hbm [resolvable:$true] %s153_s21 }
  0x34   : > { %s619_s3 = sshra.s32 %s154_s21, 4  ;;  %s620_s3 = int_to_ptr.hbm [resolvable:$true] %s619_s3 }
  0x35   : > { %s621_s1 = scalar_lea.hbm %s620_s3, 16  ;;  %p627_p3 = scmp.lt.s32.totalorder %s620_s3, %s969_s2 }
  0x36   : > { %p622_p11 = scmp.ne.s32.totalorder %s620_s3, %s621_s1  ;;  %p628_p4 = scmp.lt.s32.totalorder %s626_s8, %s621_s1 }
  0x38   : > { %p624_p13 = pnand %p623_p12, %p622_p11  ;;  %p629_p6 = por %p628_p4, %p627_p3 }
  0x3a   : > { %p625_p1 = pneg %p624_p13 }
  0x3c   : > { %p630_p8 = pnand %p629_p6, %p625_p1 }
  0x3e   : > { %633 = shalt.err (!%p630_p8)
}
  0x3f   : > { %494 = dma.hbm_to_vmem [thread:$0]  (!%p879_p10), %s154_s21, 256, %s156_s13, %s142_s22  }
  0x40   : > { %164 = sbr.rel (%p842_p9) target bundleno = 284 (0x11c), region = 28  ;;  %s166_s20 = sand.u32 (!%p842_p9), 1, %s737_s25  }
  0x41   : > { %s899_s15 = sshll.u32 (!%p842_p9), %s166_s20, 4  ;;  %s167_s16 = scalar_lea.sflag (!%p842_p9), [#allocation6], %s166_s20 }
  0x42   : > { %s170_s17 = scalar_lea.vmem (!%p842_p9), [#allocation5], %s899_s15 }
  0x45   : > { %708 = dma.done.wait (%p865_p2), %s167_s16, 256  }
  0x46   : > { %710 = vsyncadd (%p865_p2), %s167_s16, 4294967040 }
  0x47   : > { %712 = dma.done.wait (%p57_p0), [#allocation9], 8192  }
  0x48   : > { %714 = vsyncadd (%p57_p0), [#allocation9], 4294959104  ;;  %s194_s3 = sand.u32 1, %s725_s0   ;;  %s198_s9 = sld [smem:[#allocation4 + %s820_s28]] }
  0x49   : > { %s465_s1 = sshll.u32 %s194_s3, 4 }
  0x4a   : > { %s914_s10 = scalar_lea.vmem [#allocation10], %s465_s1 }
  0x4e   : > { %p466_p9 = scmp.eq.s32.totalorder %s198_s9, 0 }
  0x50   : > { %202 = sbr.rel (%p466_p9) target bundleno = 253 (0xfd), region = 40 }
  0x55   : > { %v236_v0 = vld [vmem:[#allocation8 + $0xf8] sm:$0xff]  ;;  %v234_v2 = vld [vmem:[#allocation8 + $0xe8] sm:$0xff]  ;;  %v235_v6 = vld [vmem:[#allocation8 + $0xf0] sm:$0xff] }
  0x56   : > { %v268_v1 = vld [vmem:[#allocation8 + $0x1f8] sm:$0xff]  ;;  %309 = vmatpush.msra.mxu2 %v236_v0  ;;  %v266_v3 = vld [vmem:[#allocation8 + $0x1e8] sm:$0xff]  ;;  %v267_v7 = vld [vmem:[#allocation8 + $0x1f0] sm:$0xff]  ;;  %269 = vmatpush.msra.mxu0 %v235_v6 }
  0x57   : > { %329 = vmatpush.msra.mxu3 %v268_v1  ;;  %v232_v4 = vld [vmem:[#allocation8 + $0xd8] sm:$0xff]  ;;  %v233_v8 = vld [vmem:[#allocation8 + $0xe0] sm:$0xff]  ;;  %289 = vmatpush.msra.mxu1 %v267_v7  ;;  %v230_v10 = vld [vmem:[#allocation8 + $0xc8] sm:$0xff] }
  0x58   : > { %v264_v5 = vld [vmem:[#allocation8 + $0x1d8] sm:$0xff]  ;;  %310 = vmatpush.msra.mxu2 %v234_v2  ;;  %v265_v9 = vld [vmem:[#allocation8 + $0x1e0] sm:$0xff]  ;;  %v262_v11 = vld [vmem:[#allocation8 + $0x1c8] sm:$0xff]  ;;  %270 = vmatpush.msra.mxu0 %v233_v8 }
  0x59   : > { %330 = vmatpush.msra.mxu3 %v266_v3  ;;  %v231_v12 = vld [vmem:[#allocation8 + $0xd0] sm:$0xff]  ;;  %290 = vmatpush.msra.mxu1 %v265_v9  ;;  %v228_v14 = vld [vmem:[#allocation8 + $0xb8] sm:$0xff]  ;;  %v229_v16 = vld [vmem:[#allocation8 + $0xc0] sm:$0xff] }
  0x5a   : > { %311 = vmatpush.msra.mxu2 %v232_v4  ;;  %v263_v13 = vld [vmem:[#allocation8 + $0x1d0] sm:$0xff]  ;;  %v260_v15 = vld [vmem:[#allocation8 + $0x1b8] sm:$0xff]  ;;  %v261_v17 = vld [vmem:[#allocation8 + $0x1c0] sm:$0xff]  ;;  %271 = vmatpush.msra.mxu0 %v231_v12 }
  0x5b   : > { %331 = vmatpush.msra.mxu3 %v264_v5  ;;  %291 = vmatpush.msra.mxu1 %v263_v13  ;;  %v226_v18 = vld [vmem:[#allocation8 + $0xa8] sm:$0xff]  ;;  %v227_v20 = vld [vmem:[#allocation8 + $0xb0] sm:$0xff]  ;;  %v224_v22 = vld [vmem:[#allocation8 + $0x98] sm:$0xff] }
  0x5c   : > { %312 = vmatpush.msra.mxu2 %v230_v10  ;;  %v258_v19 = vld [vmem:[#allocation8 + $0x1a8] sm:$0xff]  ;;  %v259_v21 = vld [vmem:[#allocation8 + $0x1b0] sm:$0xff]  ;;  %272 = vmatpush.msra.mxu0 %v229_v16  ;;  %v256_v23 = vld [vmem:[#allocation8 + $0x198] sm:$0xff] }
  0x5d   : > { %332 = vmatpush.msra.mxu3 %v262_v11  ;;  %292 = vmatpush.msra.mxu1 %v261_v17  ;;  %v225_v24 = vld [vmem:[#allocation8 + $0xa0] sm:$0xff]  ;;  %v222_v26 = vld [vmem:[#allocation8 + $0x88] sm:$0xff]  ;;  %v223_v28 = vld [vmem:[#allocation8 + $0x90] sm:$0xff] }
  0x5e   : > { %313 = vmatpush.msra.mxu2 %v228_v14  ;;  %v257_v25 = vld [vmem:[#allocation8 + $0x1a0] sm:$0xff]  ;;  %273 = vmatpush.msra.mxu0 %v227_v20  ;;  %v254_v27 = vld [vmem:[#allocation8 + $0x188] sm:$0xff]  ;;  %v255_v29 = vld [vmem:[#allocation8 + $0x190] sm:$0xff] }
  0x5f   : > { %333 = vmatpush.msra.mxu3 %v260_v15  ;;  %293 = vmatpush.msra.mxu1 %v259_v21  ;;  %v220_v30 = vld [vmem:[#allocation8 + $0x78] sm:$0xff]  ;;  %v221_v32 = vld [vmem:[#allocation8 + $0x80] sm:$0xff]  ;;  %v218_v34 = vld [vmem:[#allocation8 + $0x68] sm:$0xff] }
  0x60   : > { %314 = vmatpush.msra.mxu2 %v226_v18  ;;  %274 = vmatpush.msra.mxu0 %v225_v24  ;;  %v252_v31 = vld [vmem:[#allocation8 + $0x178] sm:$0xff]  ;;  %v253_v33 = vld [vmem:[#allocation8 + $0x180] sm:$0xff]  ;;  %v250_v35 = vld [vmem:[#allocation8 + $0x168] sm:$0xff] }
  0x61   : > { %334 = vmatpush.msra.mxu3 %v258_v19  ;;  %294 = vmatpush.msra.mxu1 %v257_v25  ;;  %v219_v36 = vld [vmem:[#allocation8 + $0x70] sm:$0xff]  ;;  %v216_v38 = vld [vmem:[#allocation8 + $0x58] sm:$0xff]  ;;  %v217_v40 = vld [vmem:[#allocation8 + $0x60] sm:$0xff] }
  0x62   : > { %315 = vmatpush.msra.mxu2 %v224_v22  ;;  %275 = vmatpush.msra.mxu0 %v223_v28  ;;  %v251_v37 = vld [vmem:[#allocation8 + $0x170] sm:$0xff]  ;;  %v248_v39 = vld [vmem:[#allocation8 + $0x158] sm:$0xff]  ;;  %v249_v41 = vld [vmem:[#allocation8 + $0x160] sm:$0xff] }
  0x63   : > { %335 = vmatpush.msra.mxu3 %v256_v23  ;;  %295 = vmatpush.msra.mxu1 %v255_v29  ;;  %v214_v42 = vld [vmem:[#allocation8 + $0x48] sm:$0xff]  ;;  %v215_v44 = vld [vmem:[#allocation8 + $0x50] sm:$0xff]  ;;  %v212_v46 = vld [vmem:[#allocation8 + $0x38] sm:$0xff] }
  0x64   : > { %316 = vmatpush.msra.mxu2 %v222_v26  ;;  %276 = vmatpush.msra.mxu0 %v221_v32  ;;  %v246_v43 = vld [vmem:[#allocation8 + $0x148] sm:$0xff]  ;;  %v247_v45 = vld [vmem:[#allocation8 + $0x150] sm:$0xff]  ;;  %v244_v47 = vld [vmem:[#allocation8 + $0x138] sm:$0xff] }
  0x65   : > { %336 = vmatpush.msra.mxu3 %v254_v27  ;;  %296 = vmatpush.msra.mxu1 %v253_v33  ;;  %v213_v48 = vld [vmem:[#allocation8 + $0x40] sm:$0xff]  ;;  %v210_v50 = vld [vmem:[#allocation8 + $0x28] sm:$0xff]  ;;  %v211_v52 = vld [vmem:[#allocation8 + $0x30] sm:$0xff] }
  0x66   : > { %317 = vmatpush.msra.mxu2 %v220_v30  ;;  %277 = vmatpush.msra.mxu0 %v219_v36  ;;  %v245_v49 = vld [vmem:[#allocation8 + $0x140] sm:$0xff]  ;;  %v242_v51 = vld [vmem:[#allocation8 + $0x128] sm:$0xff]  ;;  %v243_v53 = vld [vmem:[#allocation8 + $0x130] sm:$0xff] }
  0x67   : > { %337 = vmatpush.msra.mxu3 %v252_v31  ;;  %297 = vmatpush.msra.mxu1 %v251_v37  ;;  %v208_v54 = vld [vmem:[#allocation8 + $0x18] sm:$0xff]  ;;  %v209_v56 = vld [vmem:[#allocation8 + $0x20] sm:$0xff]  ;;  %v206_v58 = vld [vmem:[#allocation8 + $0x8] sm:$0xff] }
  0x68   : > { %318 = vmatpush.msra.mxu2 %v218_v34  ;;  %278 = vmatpush.msra.mxu0 %v217_v40  ;;  %v240_v55 = vld [vmem:[#allocation8 + $0x118] sm:$0xff]  ;;  %v241_v57 = vld [vmem:[#allocation8 + $0x120] sm:$0xff]  ;;  %v238_v59 = vld [vmem:[#allocation8 + $0x108] sm:$0xff] }
  0x69   : > { %338 = vmatpush.msra.mxu3 %v250_v35  ;;  %298 = vmatpush.msra.mxu1 %v249_v41  ;;  %v203_v60 = vld [vmem:[%s170_s17] sm:$0xff]  ;;  %v204_v61 = vld [vmem:[%s170_s17 + $0x8] sm:$0xff] }
  0x6a   : > { %319 = vmatpush.msra.mxu2 %v216_v38  ;;  %279 = vmatpush.msra.mxu0 %v215_v44  ;;  %v207_v62 = vld [vmem:[#allocation8 + $0x10] sm:$0xff]  ;;  %v205_v0 = vld [vmem:[#allocation8] sm:$0xff] }
  0x6b   : > { %339 = vmatpush.msra.mxu3 %v248_v39  ;;  %299 = vmatpush.msra.mxu1 %v247_v45  ;;  %v239_v63 = vld [vmem:[#allocation8 + $0x110] sm:$0xff]  ;;  %v237_v1 = vld [vmem:[#allocation8 + $0x100] sm:$0xff] }
  0x6c   : > { %320 = vmatpush.msra.mxu2 %v214_v42  ;;  %280 = vmatpush.msra.mxu0 %v213_v48 }
  0x6d   : > { %340 = vmatpush.msra.mxu3 %v246_v43  ;;  %300 = vmatpush.msra.mxu1 %v245_v49 }
  0x6e   : > { %321 = vmatpush.msra.mxu2 %v212_v46  ;;  %281 = vmatpush.msra.mxu0 %v211_v52 }
  0x6f   : > { %341 = vmatpush.msra.mxu3 %v244_v47  ;;  %301 = vmatpush.msra.mxu1 %v243_v53 }
  0x70   : > { %322 = vmatpush.msra.mxu2 %v210_v50  ;;  %282 = vmatpush.msra.mxu0 %v209_v56 }
  0x71   : > { %342 = vmatpush.msra.mxu3 %v242_v51  ;;  %302 = vmatpush.msra.mxu1 %v241_v57 }
  0x72   : > { %323 = vmatpush.msra.mxu2 %v208_v54  ;;  %283 = vmatpush.msra.mxu0 %v207_v62 }
  0x73   : > { %343 = vmatpush.msra.mxu3 %v240_v55  ;;  %303 = vmatpush.msra.mxu1 %v239_v63 }
  0x74   : > { %324 = vmatpush.msra.mxu2 %v206_v58  ;;  %284 = vmatpush.msra.mxu0 %v205_v0 }
  0x75   : > { %344 = vmatpush.msra.mxu3 %v238_v59  ;;  %325 = vmatmul.f32.vlgmr.msra.gmra.mxu2 %v203_v60 }
  0x76   : > { %345 = vmatmul.f32.vlgmr.msra.gmra.mxu3 %v204_v61  ;;  %304 = vmatpush.msra.mxu1 %v237_v1 }
  0x77   : > { %285 = vmatmul.f32.vlgmr.msra.gmra.mxu0 %v203_v60  ;;  %305 = vmatmul.f32.vlgmr.msra.gmra.mxu1 %v204_v61 }
  0xf4   : > { %v286_v2 = vpop.f32.mrf.mxu0  ;;  %v306_v3 = vpop.f32.mrf.mxu1 }
  0xf5   : > { %v307_v4 = vadd.f32 %v306_v3, %v286_v2 }
  0xf7   : > { %349 = vst [vmem:[%s914_s10] sm:$0xff] %v307_v4 }
  0xf8   : > { %v326_v5 = vpop.f32.mrf.mxu2 }
  0xf9   : > { %v346_v6 = vpop.f32.mrf.mxu3 }
  0xfa   : > { %v347_v7 = vadd.f32 %v346_v6, %v326_v5 }
  0xfc   : > { %350 = vst [vmem:[%s914_s10 + $0x8] sm:$0xff] %v347_v7 }
  0xfd PF: > { %s351_s19 = sld [smem:[#allocation4 + %s820_s28]] }
 0x103   : > { %p467_p0 = scmp.ne.s32.totalorder %s351_s19, 0 }
 0x105   : > { %355 = sbr.rel (%p467_p0) target bundleno = 269 (0x10d), region = 44 }
 0x10a   : > { %v752_v8 = vmov 0.0  }
 0x10b   : > { %356 = vst [vmem:[%s914_s10] sm:$0xff] %v752_v8 }
 0x10c   : > { %357 = vst [vmem:[%s914_s10 + $0x8] sm:$0xff] %v752_v8 }
 0x10d PF: > { %s474_s13 = sshll.u32 %s820_s28, 4  ;;  %s372_s7 = sshll.u32 %s914_s10, 4  ;;  %s373_s7 = int_to_ptr.vmem [resolvable:$true] %s372_s7 }
 0x10e   : > { %s370_s22 = scalar_lea.hbm %s971_s4, %s474_s13  ;;  %s359_s8 = scalar_lea.sflag [#allocation7], %s194_s3 }
 0x10f   : > { %s374_s29 = sshll.u32 %s370_s22, 4  ;;  %s669_s28 = scalar_lea.hbm %s971_s4, 256  ;;  %s375_s29 = int_to_ptr.hbm [resolvable:$true] %s374_s29 }
 0x110   : > { %s663_s11 = sshra.s32 %s375_s29, 4  ;;  %s664_s11 = int_to_ptr.hbm [resolvable:$true] %s663_s11 }
 0x111   : > { %s665_s12 = scalar_lea.hbm %s664_s11, 16  ;;  %p670_p12 = scmp.lt.s32.totalorder %s664_s11, %s971_s4 }
 0x112   : > { %p666_p2 = scmp.ne.s32.totalorder %s664_s11, %s665_s12  ;;  %p671_p13 = scmp.lt.s32.totalorder %s669_s28, %s665_s12 }
 0x114   : > { %p667_p10 = pnand %p666_p2, %p829_p5  ;;  %p672_p1 = por %p671_p13, %p670_p12 }
 0x116   : > { %p668_p11 = pneg %p667_p10 }
 0x118   : > { %p673_p3 = pnand %p672_p1, %p668_p11 }
 0x11a   : > { %676 = shalt.err (!%p673_p3)
}
 0x11b   : > { %483 = dma.vmem_to_hbm [thread:$0]  (%p829_p5), %s373_s7, 256, %s375_s29, %s359_s8  }
 0x11c PF: > { %p502_p4 = scmp.ge.s32.totalorder %s745_s27, 2  ;;  %s386_s3 = sand.u32 1, %s721_s23  }
 0x11d   : > { %s387_s9 = scalar_lea.sflag [#allocation7], %s386_s3 }
 0x11e   : > { %p496_p6 = pnand %p502_p4, %p834_p7 }
 0x120   : > { %p497_p8 = pneg %p496_p6 }
 0x122   : > { %716 = dma.done.wait (%p497_p8), %s387_s9, 256  }
 0x123   : > { %718 = vsyncadd (%p497_p8), %s387_s9, 4294967040  ;;  %s981_s30 = sld [smem:[#allocation17_spill]]  ;;  %p31_p5 = scmp.ge.s32.totalorder %s851_s14, 18  }
 0x124   : > { %s982_s23 = smov %s725_s0  ;;  %s983_s0 = smov %s729_s24 }
 0x125   : > { %s984_s24 = smov %s873_s6  ;;  %s985_s1 = smov %s737_s25 }
 0x126   : > { %s986_s25 = smov %s741_s26  ;;  %s988_s27 = smov %s851_s14 }
 0x127   :  { %33 = sbr.rel (!%p31_p5) target bundleno = 16 (0x10), region = 85 }
 0x129   : > { %s987_s26 = smov %s981_s30 }
 0x12c   :  { %393 = vsyncpa [#allocation6], 1 }
 0x12d   :  { %395 = vsyncpa [#allocation6 + $0x1], 1 }
 0x12e   :  { %396 = vsyncpa [#allocation9], 1 }
 0x12f   :  { %397 = vsyncpa [#allocation7], 1 }
 0x130   :  { %399 = vsyncpa [#allocation7 + $0x1], 1 }

</bundles_post_ra>
